<compile_context>
chip_gen: v7x
topology: tpu7x:2x2x1
jax: 0.10.0
libtpu: 0.0.40
codegen_flags: <defaults>
</compile_context>

<pallas_src>
import functools

import jax
import jax.numpy as jnp
import numpy as np
from jax import lax
from jax.experimental import pallas as pl
from jax.experimental.pallas import tpu as pltpu


def _yolo_kernel(anchors_ref, pred_ref, gxy_ref, out_ref, *, stride, nA, S, attrs):
    # anchors_ref: SMEM (nA, 2) pixel-space anchors (stride already folded in)
    # pred_ref:    VMEM (1, nA, attrs, S) raw predictions for this batch index
    # gxy_ref:     VMEM (2, S) grid offsets: row 0 = grid_x, row 1 = grid_y
    # out_ref:     VMEM (1, nA, attrs, S)
    gxy = gxy_ref[...]                                    # (2, S)
    row2 = lax.broadcasted_iota(jnp.int32, (2, S), 0)     # 0 -> w-row, 1 -> h-row
    stride_f = jnp.float32(stride)

    for a in range(nA):                                   # static unroll, nA is tiny
        p = pred_ref[0, a].astype(jnp.float32)            # (attrs, S), lane-dense
        aw = anchors_ref[a, 0]                            # scalar (pixel anchor w)
        ah = anchors_ref[a, 1]                            # scalar (pixel anchor h)

        xy = (jax.nn.sigmoid(p[0:2, :]) + gxy) * stride_f        # (2, S)
        wh = jnp.exp(p[2:4, :]) * jnp.where(row2 == 0, aw, ah)   # (2, S)
        rest = jax.nn.sigmoid(p[4:, :])                          # (attrs-4, S)

        out_ref[0, a] = jnp.concatenate([xy, wh, rest], axis=0).astype(out_ref.dtype)


class YOLOLayer:
    """Inference-only Pallas port of the PyTorch YOLOLayer."""

    def __init__(self, anchors, num_classes, img_dim, layer_no):
        self.anchors = anchors
        self.num_anchors = len(anchors)
        self.num_classes = num_classes
        self.bbox_attrs = 5 + num_classes
        self.image_dim = img_dim
        self.layer_no = layer_no

    def __call__(self, x):
        nB, nC, nG, _ = x.shape
        nA = self.num_anchors
        attrs = self.bbox_attrs
        assert nC == nA * attrs
        S = nG * nG
        stride = self.image_dim / nG

        # Free, contiguous reshape: (nB, nA*attrs, nG, nG) -> (nB, nA, attrs, S).
        # attrs sits on sublanes, S = nG*nG on the lane axis (lane-dense blocks).
        pred = x.reshape(nB, nA, attrs, S)

        # Pixel-space anchors: exp(w) * (a/stride) * stride == exp(w) * a.
        anchors_px = jnp.asarray(self.anchors, dtype=jnp.float32).reshape(nA, 2)

        # Lane-dense grid offsets (2, S): row 0 = grid_x (s % nG), row 1 = grid_y.
        s_idx = np.arange(S)
        gxy = jnp.asarray(
            np.stack([s_idx % nG, s_idx // nG], axis=0), dtype=jnp.float32
        )

        kernel = functools.partial(
            _yolo_kernel, stride=float(stride), nA=nA, S=S, attrs=attrs
        )

        out = pl.pallas_call(
            kernel,
            out_shape=jax.ShapeDtypeStruct((nB, nA, attrs, S), jnp.float32),
            grid=(nB,),
            in_specs=[
                pl.BlockSpec(memory_space=pltpu.MemorySpace.SMEM),          # anchors
                pl.BlockSpec((1, nA, attrs, S), lambda b: (b, 0, 0, 0)),    # pred
                pl.BlockSpec((2, S), lambda b: (0, 0)),                     # gxy
            ],
            out_specs=pl.BlockSpec((1, nA, attrs, S), lambda b: (b, 0, 0, 0)),
            compiler_params=pltpu.CompilerParams(
                dimension_semantics=("parallel",)
            ),
        )(anchors_px, pred, gxy)

        # Single attrs-last permute on the output, then flatten to torch layout.
        out = jnp.transpose(out, (0, 1, 3, 2)).reshape(nB, nA * S, attrs)
        return out


def _reference(x, anchors, num_classes, img_dim):
    """Pure-JAX reference mirroring the PyTorch forward (targets=None)."""
    nB, _, nG, _ = x.shape
    nA = len(anchors)
    attrs = 5 + num_classes
    stride = img_dim / nG
    pred = x.reshape(nB, nA, attrs, nG, nG).transpose(0, 1, 3, 4, 2)
    px = jax.nn.sigmoid(pred[..., 0])
    py = jax.nn.sigmoid(pred[..., 1])
    pw = pred[..., 2]
    ph = pred[..., 3]
    conf = jax.nn.sigmoid(pred[..., 4])
    cls = jax.nn.sigmoid(pred[..., 5:])
    sa = jnp.asarray([(a / stride, b / stride) for a, b in anchors], jnp.float32)
    aw = sa[:, 0].reshape(1, nA, 1, 1)
    ah = sa[:, 1].reshape(1, nA, 1, 1)
    gr = jnp.arange(nG, dtype=jnp.float32)
    gx = jnp.tile(gr[None, :], (nG, 1)).reshape(1, 1, nG, nG)
    gy = jnp.tile(gr[:, None], (1, nG)).reshape(1, 1, nG, nG)
    boxes = jnp.stack(
        [px + gx, py + gy, jnp.exp(pw) * aw, jnp.exp(ph) * ah], axis=-1
    )
    out = jnp.concatenate(
        [
            boxes.reshape(nB, -1, 4) * stride,
            conf.reshape(nB, -1, 1),
            cls.reshape(nB, -1, num_classes),
        ],
        axis=-1,
    )
    return out


if __name__ == "__main__":
    # Small, deterministic config: 3 anchors, 3 classes -> bbox_attrs = 8,
    # channels = 3 * 8 = 24, grid 16x16 (S = 256), image dim 64 -> stride 4.
    anchors = [(10.0, 13.0), (16.0, 30.0), (33.0, 23.0)]
    num_classes = 3
    img_dim = 64
    nB, nG = 2, 16
    nA = len(anchors)
    attrs = 5 + num_classes

    key = jax.random.PRNGKey(0)
    x = jax.random.normal(key, (nB, nA * attrs, nG, nG), dtype=jnp.float32)

    layer = YOLOLayer(anchors, num_classes, img_dim, layer_no=0)
    out = jax.block_until_ready(layer(x))

    ref = jax.block_until_ready(_reference(x, anchors, num_classes, img_dim))
    np.testing.assert_allclose(np.asarray(out), np.asarray(ref), rtol=1e-5, atol=1e-5)

    print("KERNEL_OK")
</pallas_src>

<mosaic_0001>
module attributes {stable_mosaic.version = 11 : i64} {
  func.func @_yolo_kernel(%arg0: i32, %arg1: memref<3x2xf32, #tpu.memory_space<smem>>, %arg2: memref<1x3x8x256xf32, #tpu.memory_space<vmem>>, %arg3: memref<2x256xf32, #tpu.memory_space<vmem>>, %arg4: memref<1x3x8x256xf32, #tpu.memory_space<vmem>>) attributes {dimension_semantics = [#tpu.dimension_semantics<parallel>], iteration_bounds = array<i64: 2>, scalar_prefetch = 0 : i64, scratch_operands = 0 : i64, tpu.core_type = #tpu.core_type<tc>, window_params = [{transform_indices = @transform_0, window_bounds = array<i64: 3, 2>}, {transform_indices = @transform_1, window_bounds = array<i64: 1, 3, 8, 256>}, {pipeline_mode = #tpu.pipeline_mode<synchronous>, transform_indices = @transform_2, window_bounds = array<i64: 2, 256>}, {transform_indices = @transform_3, window_bounds = array<i64: 1, 3, 8, 256>}]} {
    %c0 = arith.constant 0 : index
    %c0_0 = arith.constant 0 : index
    %0 = vector.load %arg3[%c0, %c0_0] : memref<2x256xf32, #tpu.memory_space<vmem>>, vector<2x256xf32>
    %1 = tpu.iota {dimensions = array<i32: 0>} : vector<2x256xi32>
    %c0_1 = arith.constant 0 : index
    %c0_2 = arith.constant 0 : index
    %c0_3 = arith.constant 0 : index
    %c0_4 = arith.constant 0 : index
    %2 = vector.load %arg2[%c0_1, %c0_2, %c0_3, %c0_4] : memref<1x3x8x256xf32, #tpu.memory_space<vmem>>, vector<1x1x8x256xf32>
    %3 = vector.shape_cast %2 : vector<1x1x8x256xf32> to vector<8x256xf32>
    %c0_5 = arith.constant 0 : index
    %c0_6 = arith.constant 0 : index
    %4 = memref.load %arg1[%c0_5, %c0_6] : memref<3x2xf32, #tpu.memory_space<smem>>
    %c0_7 = arith.constant 0 : index
    %c1 = arith.constant 1 : index
    %5 = memref.load %arg1[%c0_7, %c1] : memref<3x2xf32, #tpu.memory_space<smem>>
    %6 = vector.extract_strided_slice %3 {offsets = [0, 0], sizes = [2, 256], strides = [1, 1]} : vector<8x256xf32> to vector<2x256xf32>
    %7 = arith.negf %6 : vector<2x256xf32>
    %8 = math.exp %7 : vector<2x256xf32>
    %cst = arith.constant 1.000000e+00 : f32
    %9 = vector.broadcast %cst : f32 to vector<2x256xf32>
    %10 = arith.addf %9, %8 : vector<2x256xf32>
    %11 = arith.divf %9, %10 : vector<2x256xf32>
    %12 = arith.addf %11, %0 : vector<2x256xf32>
    %cst_8 = arith.constant 4.000000e+00 : f32
    %13 = vector.broadcast %cst_8 : f32 to vector<2x256xf32>
    %14 = arith.mulf %12, %13 : vector<2x256xf32>
    %15 = vector.extract_strided_slice %3 {offsets = [2, 0], sizes = [2, 256], strides = [1, 1]} : vector<8x256xf32> to vector<2x256xf32>
    %16 = math.exp %15 : vector<2x256xf32>
    %c0_i32 = arith.constant 0 : i32
    %17 = vector.broadcast %c0_i32 : i32 to vector<2x256xi32>
    %18 = arith.cmpi eq, %1, %17 : vector<2x256xi32>
    %19 = vector.broadcast %4 : f32 to vector<2x256xf32>
    %20 = vector.broadcast %5 : f32 to vector<2x256xf32>
    %21 = arith.select %18, %19, %20 : vector<2x256xi1>, vector<2x256xf32>
    %22 = arith.mulf %16, %21 : vector<2x256xf32>
    %23 = vector.extract_strided_slice %3 {offsets = [4, 0], sizes = [4, 256], strides = [1, 1]} : vector<8x256xf32> to vector<4x256xf32>
    %24 = arith.negf %23 : vector<4x256xf32>
    %25 = math.exp %24 : vector<4x256xf32>
    %cst_9 = arith.constant 1.000000e+00 : f32
    %26 = vector.broadcast %cst_9 : f32 to vector<4x256xf32>
    %27 = arith.addf %26, %25 : vector<4x256xf32>
    %28 = arith.divf %26, %27 : vector<4x256xf32>
    %29 = tpu.concatenate %14, %22, %28 in 0 : vector<2x256xf32>, vector<2x256xf32>, vector<4x256xf32> -> vector<8x256xf32>
    %c0_10 = arith.constant 0 : index
    %c0_11 = arith.constant 0 : index
    %c0_12 = arith.constant 0 : index
    %c0_13 = arith.constant 0 : index
    %30 = vector.load %arg4[%c0_10, %c0_11, %c0_12, %c0_13] : memref<1x3x8x256xf32, #tpu.memory_space<vmem>>, vector<1x1x8x256xf32>
    %31 = vector.shape_cast %30 : vector<1x1x8x256xf32> to vector<8x256xf32>
    %32 = vector.shape_cast %29 : vector<8x256xf32> to vector<1x1x8x256xf32>
    tpu.vector_store %arg4[%c0_10, %c0_11, %c0_12, %c0_13], %32 {strides = array<i32>} : memref<1x3x8x256xf32, #tpu.memory_space<vmem>>, vector<1x1x8x256xf32>,
    %c0_14 = arith.constant 0 : index
    %c1_15 = arith.constant 1 : index
    %c0_16 = arith.constant 0 : index
    %c0_17 = arith.constant 0 : index
    %33 = vector.load %arg2[%c0_14, %c1_15, %c0_16, %c0_17] : memref<1x3x8x256xf32, #tpu.memory_space<vmem>>, vector<1x1x8x256xf32>
    %34 = vector.shape_cast %33 : vector<1x1x8x256xf32> to vector<8x256xf32>
    %c1_18 = arith.constant 1 : index
    %c0_19 = arith.constant 0 : index
    %35 = memref.load %arg1[%c1_18, %c0_19] : memref<3x2xf32, #tpu.memory_space<smem>>
    %c1_20 = arith.constant 1 : index
    %c1_21 = arith.constant 1 : index
    %36 = memref.load %arg1[%c1_20, %c1_21] : memref<3x2xf32, #tpu.memory_space<smem>>
    %37 = vector.extract_strided_slice %34 {offsets = [0, 0], sizes = [2, 256], strides = [1, 1]} : vector<8x256xf32> to vector<2x256xf32>
    %38 = arith.negf %37 : vector<2x256xf32>
    %39 = math.exp %38 : vector<2x256xf32>
    %cst_22 = arith.constant 1.000000e+00 : f32
    %40 = vector.broadcast %cst_22 : f32 to vector<2x256xf32>
    %41 = arith.addf %40, %39 : vector<2x256xf32>
    %42 = arith.divf %40, %41 : vector<2x256xf32>
    %43 = arith.addf %42, %0 : vector<2x256xf32>
    %cst_23 = arith.constant 4.000000e+00 : f32
    %44 = vector.broadcast %cst_23 : f32 to vector<2x256xf32>
    %45 = arith.mulf %43, %44 : vector<2x256xf32>
    %46 = vector.extract_strided_slice %34 {offsets = [2, 0], sizes = [2, 256], strides = [1, 1]} : vector<8x256xf32> to vector<2x256xf32>
    %47 = math.exp %46 : vector<2x256xf32>
    %c0_i32_24 = arith.constant 0 : i32
    %48 = vector.broadcast %c0_i32_24 : i32 to vector<2x256xi32>
    %49 = arith.cmpi eq, %1, %48 : vector<2x256xi32>
    %50 = vector.broadcast %35 : f32 to vector<2x256xf32>
    %51 = vector.broadcast %36 : f32 to vector<2x256xf32>
    %52 = arith.select %49, %50, %51 : vector<2x256xi1>, vector<2x256xf32>
    %53 = arith.mulf %47, %52 : vector<2x256xf32>
    %54 = vector.extract_strided_slice %34 {offsets = [4, 0], sizes = [4, 256], strides = [1, 1]} : vector<8x256xf32> to vector<4x256xf32>
    %55 = arith.negf %54 : vector<4x256xf32>
    %56 = math.exp %55 : vector<4x256xf32>
    %cst_25 = arith.constant 1.000000e+00 : f32
    %57 = vector.broadcast %cst_25 : f32 to vector<4x256xf32>
    %58 = arith.addf %57, %56 : vector<4x256xf32>
    %59 = arith.divf %57, %58 : vector<4x256xf32>
    %60 = tpu.concatenate %45, %53, %59 in 0 : vector<2x256xf32>, vector<2x256xf32>, vector<4x256xf32> -> vector<8x256xf32>
    %c0_26 = arith.constant 0 : index
    %c1_27 = arith.constant 1 : index
    %c0_28 = arith.constant 0 : index
    %c0_29 = arith.constant 0 : index
    %61 = vector.load %arg4[%c0_26, %c1_27, %c0_28, %c0_29] : memref<1x3x8x256xf32, #tpu.memory_space<vmem>>, vector<1x1x8x256xf32>
    %62 = vector.shape_cast %61 : vector<1x1x8x256xf32> to vector<8x256xf32>
    %63 = vector.shape_cast %60 : vector<8x256xf32> to vector<1x1x8x256xf32>
    tpu.vector_store %arg4[%c0_26, %c1_27, %c0_28, %c0_29], %63 {strides = array<i32>} : memref<1x3x8x256xf32, #tpu.memory_space<vmem>>, vector<1x1x8x256xf32>,
    %c0_30 = arith.constant 0 : index
    %c2 = arith.constant 2 : index
    %c0_31 = arith.constant 0 : index
    %c0_32 = arith.constant 0 : index
    %64 = vector.load %arg2[%c0_30, %c2, %c0_31, %c0_32] : memref<1x3x8x256xf32, #tpu.memory_space<vmem>>, vector<1x1x8x256xf32>
    %65 = vector.shape_cast %64 : vector<1x1x8x256xf32> to vector<8x256xf32>
    %c2_33 = arith.constant 2 : index
    %c0_34 = arith.constant 0 : index
    %66 = memref.load %arg1[%c2_33, %c0_34] : memref<3x2xf32, #tpu.memory_space<smem>>
    %c2_35 = arith.constant 2 : index
    %c1_36 = arith.constant 1 : index
    %67 = memref.load %arg1[%c2_35, %c1_36] : memref<3x2xf32, #tpu.memory_space<smem>>
    %68 = vector.extract_strided_slice %65 {offsets = [0, 0], sizes = [2, 256], strides = [1, 1]} : vector<8x256xf32> to vector<2x256xf32>
    %69 = arith.negf %68 : vector<2x256xf32>
    %70 = math.exp %69 : vector<2x256xf32>
    %cst_37 = arith.constant 1.000000e+00 : f32
    %71 = vector.broadcast %cst_37 : f32 to vector<2x256xf32>
    %72 = arith.addf %71, %70 : vector<2x256xf32>
    %73 = arith.divf %71, %72 : vector<2x256xf32>
    %74 = arith.addf %73, %0 : vector<2x256xf32>
    %cst_38 = arith.constant 4.000000e+00 : f32
    %75 = vector.broadcast %cst_38 : f32 to vector<2x256xf32>
    %76 = arith.mulf %74, %75 : vector<2x256xf32>
    %77 = vector.extract_strided_slice %65 {offsets = [2, 0], sizes = [2, 256], strides = [1, 1]} : vector<8x256xf32> to vector<2x256xf32>
    %78 = math.exp %77 : vector<2x256xf32>
    %c0_i32_39 = arith.constant 0 : i32
    %79 = vector.broadcast %c0_i32_39 : i32 to vector<2x256xi32>
    %80 = arith.cmpi eq, %1, %79 : vector<2x256xi32>
    %81 = vector.broadcast %66 : f32 to vector<2x256xf32>
    %82 = vector.broadcast %67 : f32 to vector<2x256xf32>
    %83 = arith.select %80, %81, %82 : vector<2x256xi1>, vector<2x256xf32>
    %84 = arith.mulf %78, %83 : vector<2x256xf32>
    %85 = vector.extract_strided_slice %65 {offsets = [4, 0], sizes = [4, 256], strides = [1, 1]} : vector<8x256xf32> to vector<4x256xf32>
    %86 = arith.negf %85 : vector<4x256xf32>
    %87 = math.exp %86 : vector<4x256xf32>
    %cst_40 = arith.constant 1.000000e+00 : f32
    %88 = vector.broadcast %cst_40 : f32 to vector<4x256xf32>
    %89 = arith.addf %88, %87 : vector<4x256xf32>
    %90 = arith.divf %88, %89 : vector<4x256xf32>
    %91 = tpu.concatenate %76, %84, %90 in 0 : vector<2x256xf32>, vector<2x256xf32>, vector<4x256xf32> -> vector<8x256xf32>
    %c0_41 = arith.constant 0 : index
    %c2_42 = arith.constant 2 : index
    %c0_43 = arith.constant 0 : index
    %c0_44 = arith.constant 0 : index
    %92 = vector.load %arg4[%c0_41, %c2_42, %c0_43, %c0_44] : memref<1x3x8x256xf32, #tpu.memory_space<vmem>>, vector<1x1x8x256xf32>
    %93 = vector.shape_cast %92 : vector<1x1x8x256xf32> to vector<8x256xf32>
    %94 = vector.shape_cast %91 : vector<8x256xf32> to vector<1x1x8x256xf32>
    tpu.vector_store %arg4[%c0_41, %c2_42, %c0_43, %c0_44], %94 {strides = array<i32>} : memref<1x3x8x256xf32, #tpu.memory_space<vmem>>, vector<1x1x8x256xf32>,
    return
  }
  func.func @transform_0(%arg0: i32) -> (i32, i32) {
    %c0_i32 = arith.constant 0 : i32
    %c0_i32_0 = arith.constant 0 : i32
    %c0_i32_1 = arith.constant 0 : i32
    return %c0_i32, %c0_i32_0 : i32, i32
  }
  func.func @transform_1(%arg0: i32) -> (i32, i32, i32, i32) {
    %c0_i32 = arith.constant 0 : i32
    %c0_i32_0 = arith.constant 0 : i32
    %c0_i32_1 = arith.constant 0 : i32
    %c0_i32_2 = arith.constant 0 : i32
    return %arg0, %c0_i32, %c0_i32_0, %c0_i32_1 : i32, i32, i32, i32
  }
  func.func @transform_2(%arg0: i32) -> (i32, i32) {
    %c0_i32 = arith.constant 0 : i32
    %c0_i32_0 = arith.constant 0 : i32
    %c0_i32_1 = arith.constant 0 : i32
    return %c0_i32, %c0_i32_0 : i32, i32
  }
  func.func @transform_3(%arg0: i32) -> (i32, i32, i32, i32) {
    %c0_i32 = arith.constant 0 : i32
    %c0_i32_0 = arith.constant 0 : i32
    %c0_i32_1 = arith.constant 0 : i32
    %c0_i32_2 = arith.constant 0 : i32
    return %arg0, %c0_i32, %c0_i32_0, %c0_i32_1 : i32, i32, i32, i32
  }
}

</mosaic_0001>

<bundles_post_ra>
// kernel: tpu_custom_call.1
= control target key start
LH: loop header
LB: loop body
LE: loop exit
PB: predicated region body
PF: predicated region fallthrough
CT: control target
= control target key end

     0   :  { %8 = vsyncpa [#allocation5], 0  ;;  %s947_s0 = inlined_call_operand.vmem [shape: f32[3,2], index: 0, kind: input, shape index: {}]   ;;  %s948_s1 = inlined_call_operand.hbm [shape: f32[2,3,8,256], index: 1, kind: input, shape index: {}]   ;;  %s949_s2 = inlined_call_operand.vmem [shape: f32[2,256], index: 2, kind: input, shape index: {}]   ;;  %s950_s3 = inlined_call_operand.hbm [shape: f32[2,3,8,256], index: 3, kind: output, shape index: {}]  }
   0x1   :  { %9 = vsyncpa [#allocation3], 0 }
   0x2   :  { %11 = vsyncpa [#allocation3 + $0x1], 0 }
   0x3   :  { %12 = vsyncpa [#allocation4], 0 }
   0x4   :  { %14 = vsyncpa [#allocation4 + $0x1], 0  ;;  %s712_s12 = smov 0   ;;  %s714_s13 = smov 0  }
   0x5   :  { %s716_s14 = smov 0   ;;  %s718_s15 = smov 0  }
   0x6 LB: > { %s733_s16 = sadd.s32 4294967295, %s683_s15   ;;  %s437_s17 = sadd.s32 4294967294, %s683_s15   ;;  %s683_s15 = sphi %s718_s15, %s970_s15   ;;  %s679_s14 = sphi %s716_s14, %s969_s14   ;;  %s675_s13 = sphi %s714_s13, %s968_s13   ;;  %s671_s12 = sphi %s712_s12, %s967_s12  }
   0x7   : > { %s737_s18 = sadd.s32 1, %s683_s15   ;;  %s48_s19 = sadd.s32 1, %s679_s14 }
   0x8   : > { %s45_s20 = ssub.s32 %s683_s15, %s737_s18  ;;  %p55_p0 = scmp.ne.s32.totalorder %s679_s14, %s675_s13 }
   0x9   : > { %p46_p1 = scmp.eq.s32.totalorder %s45_s20, 0  ;;  %p56_p2 = scmp.eq.s32.totalorder %s683_s15, 0 }
   0xa   : > { %p61_p3 = scmp.ne.s32.totalorder %s675_s13, %s671_s12  ;;  %p952_p4 = scmp.eq.s32.totalorder %s733_s16, 0 }
   0xb   : > { %s749_s21 = scalar_select %p46_p1, %s679_s14, %s48_s19  }
   0xc   : > { %p751_p5 = por %p56_p2, %p55_p0  ;;  %p757_p6 = por %p952_p4, %p61_p3 }
   0xd   : > { %p106_p7 = scmp.eq.s32.totalorder %s733_s16, 1  ;;  %p112_p8 = scmp.eq.s32.totalorder %s437_s17, 1 }
   0xe   : > { %s955_s23 = scalar_select %p757_p6, 1, 0 }
   0xf   : > { %p438_p9 = scmp.ge.s32.totalorder %s683_s15, 1  ;;  %p119_p10 = scmp.lt.s32.totalorder %s683_s15, 3 }
  0x10   : > { %p764_p11 = por %p106_p7, %p55_p0  ;;  %p768_p12 = por %p112_p8, %p61_p3 }
  0x11   : > { %p772_p13 = pnand %p438_p9, %p119_p10  ;;  %s132_s29 = sshll.u32 %s947_s0, 4  ;;  %s133_s29 = int_to_ptr.vmem [resolvable:$true] %s132_s29 }
  0x12   : > { %s956_s24 = scalar_select %p764_p11, 1, 0 }
  0x13   : > { %s957_s25 = scalar_select %p768_p12, 1, 0 }
  0x14   : > { %p479_p1 = pneg %p772_p13  ;;  %p492_p2 = scmp.lt.s32.totalorder %s683_s15, 2 }
  0x15   : > { %s146_s4 = sand.u32 1, %s679_s14   ;;  %s568_s7 = scalar_lea.vmem %s133_s29, 64 }
  0x16   : > { %p785_p7 = pnand %p479_p1, %p952_p4  ;;  %p792_p3 = pnand %p492_p2, %p751_p5 }
  0x17   : > { %s467_s6 = smul.u32 48, %s146_s4  ;;  %p569_p8 = scmp.ne.s32.totalorder %s133_s29, %s568_s7 }
  0x18   : > { %p570_p9 = pneg %p785_p7  ;;  %p576_p12 = scmp.lt.s32.totalorder %s133_s29, %s133_s29 }
  0x19   : > { %p577_p11 = scmp.lt.s32.totalorder %s568_s7, %s568_s7 }
  0x1a   : > { %p571_p10 = pnand %p570_p9, %p569_p8 }
  0x1b   : > { %p578_p1 = por %p577_p11, %p576_p12 }
  0x1c   : > { %p572_p0 = pneg %p571_p10 }
  0x1e   : > { %p579_p4 = pnand %p578_p1, %p572_p0 }
  0x20   : > { %582 = shalt.err (!%p579_p4)
}
  0x21   : > { %s685_s8 = smov [#allocation2]   ;;  %s468_s9 = smul.u32 768, %s683_s15 }
  0x22   : > { %482 = dma.vmem_to_smem (!%p785_p7), %s133_s29, 64, %s685_s8, [#allocation5]  }
  0x23   : > { %s150_s10 = scalar_lea.vmem [#allocation6], %s467_s6  ;;  %s806_s20 = scalar_lea.hbm %s948_s1, %s468_s9 }
  0x24   : > { %s157_s11 = sshll.u32 %s150_s10, 4  ;;  %s808_s22 = scalar_lea.sflag [#allocation3], %s146_s4  ;;  %s801_s11 = int_to_ptr.vmem [resolvable:$true] %s157_s11 }
  0x25   : > { %s583_s27 = scalar_lea.hbm %s806_s20, 768  ;;  %p585_p5 = pneg %p792_p3 }
  0x26   : > { %p584_p4 = scmp.ne.s32.totalorder %s806_s20, %s583_s27  ;;  %s588_s30 = scalar_lea.hbm %s948_s1, 1536 }
  0x27   : > { %p589_p0 = scmp.lt.u32.totalorder %s806_s20, %s948_s1  ;;  %p590_p2 = scmp.lt.u32.totalorder %s588_s30, %s583_s27 }
  0x28   : > { %p586_p11 = pnand %p585_p5, %p584_p4  ;;  %p592_p8 = scmp.lt.u32.totalorder %s583_s27, %s806_s20 }
  0x29   : > { %p591_p7 = por %p590_p2, %p589_p0 }
  0x2a   : > { %p587_p12 = pneg %p586_p11 }
  0x2b   : > { %p593_p9 = por %p592_p8, %p591_p7 }
  0x2d   : > { %p594_p10 = pnand %p593_p9, %p587_p12 }
  0x2f   : > { %597 = shalt.err (!%p594_p10)
}
  0x30   : > { %s598_s4 = scalar_lea.vmem %s801_s11, 768  ;;  %s686_s8 = smov [#allocation6]  }
  0x31   : > { %p599_p1 = scmp.ne.s32.totalorder %s801_s11, %s598_s4  ;;  %s603_s9 = sshll.u32 %s686_s8, 4  ;;  %s604_s9 = int_to_ptr.vmem [resolvable:$false] %s603_s9 }
  0x32   : > { %s605_s10 = scalar_lea.vmem %s604_s9, 1536  ;;  %p606_p6 = scmp.lt.s32.totalorder %s801_s11, %s604_s9 }
  0x33   : > { %p601_p4 = pnand %p599_p1, %p585_p5  ;;  %p607_p0 = scmp.lt.s32.totalorder %s605_s10, %s598_s4 }
  0x35   : > { %p602_p11 = pneg %p601_p4  ;;  %p608_p2 = por %p607_p0, %p606_p6 }
  0x37   : > { %p609_p7 = pnand %p608_p2, %p602_p11 }
  0x39   : > { %612 = shalt.err (!%p609_p7)
}
  0x3a   : > { %s687_s17 = smov 256   ;;  %s688_s19 = smov 16  }
  0x3b   : > { %486 = dma.hbm_to_vmem [thread:$0]  (!%p792_p3), %s806_s20, 768, %s801_s11, %s808_s22, %s687_s17, %s687_s17, %s688_s19  }
  0x3c   : > { %169 = sbr.rel (%p772_p13) target bundleno = 133 (0x85), region = 32  ;;  %p961_p5 = scmp.eq.s32.totalorder (!%p772_p13), %s733_s16, 0 }
  0x43   : > { %658 = dma.done.wait (%p961_p5), [#allocation5], 64   ;;  %p962_p12 = pmov %p961_p5 }
  0x44   : > { %s843_s27 = sand.u32 1, %s675_s13   ;;  %p963_p6 = scmp.ne.s32.totalorder %s955_s23, 0 }
  0x45   : > { %660 = vsyncadd (%p962_p12), [#allocation5], 4294967232  ;;  %s469_s28 = smul.u32 48, %s843_s27  ;;  %s176_s29 = scalar_lea.sflag [#allocation3], %s843_s27 }
  0x47   : > { %s179_s5 = scalar_lea.vmem [#allocation6], %s469_s28 }
  0x48   : > { %662 = dma.done.wait (%p963_p6), %s176_s29, 768  }
  0x49   : > { %664 = vsyncadd (%p963_p6), %s176_s29, 4294966528 }
  0x4a   : > { %184 = sfence }
  0x4b   : > { %v206_v0 = vld [vmem:[%s179_s5] sm:$0xff]  ;;  %v207_v2 = vld [vmem:[%s179_s5 + $0x8] sm:$0xff]  ;;  %v448_v3 = vld [vmem:[%s179_s5 + $0x10] sm:$0xff]  ;;  %v204_v10 = vlaneseq  ;;  %s853_s26 = sld [smem:[#allocation2]]  ;;  %s444_s23 = sld [smem:[#allocation2 + $0x1]]  ;;  %vm250_vm1 = vcmask 1041408  }
  0x4c   : > { %v445_v1 = vmul.f32 -1.442695, %v206_v0  ;;  %v449_v4 = vld [vmem:[%s179_s5 + $0x18] sm:$0xff]  ;;  %v446_v5 = vmul.f32 -1.442695, %v207_v2  ;;  %v456_v7 = vld [vmem:[%s179_s5 + $0x20] sm:$0xff] }
  0x4d   : > { %v452_v6 = vmul.f32 -1.442695, %v448_v3  ;;  %v453_v8 = vmul.f32 -1.442695, %v449_v4  ;;  %v457_v9 = vld [vmem:[%s179_s5 + $0x28] sm:$0xff]  ;;  %v205_v14 = vshrl.u32 %v204_v10, 7 }
  0x4e   : > { %532 = vpow2.f32 %v445_v1  ;;  %v460_v11 = vmul.f32 -1.442695, %v456_v7  ;;  %v237_v12 = vmul.f32 1.442695, %v206_v0  ;;  %v461_v13 = vmul.f32 -1.442695, %v457_v9 }
  0x4f   : > { %534 = vpow2.f32 %v446_v5  ;;  %v239_v16 = vmul.f32 1.442695, %v207_v2  ;;  %s855_s11 = sld [smem:[#allocation2 + $0x80]]  ;;  %s857_s20 = sld [smem:[#allocation2 + $0x81]]  ;;  %v279_v18 = vmul.f32 1.442695, %v448_v3 }
  0x50   : > { %536 = vpow2.f32 %v452_v6  ;;  %vm241_vm0 = vcmp.eq.s32.totalorder %v205_v14, 0  ;;  %v281_v20 = vmul.f32 1.442695, %v449_v4  ;;  %s860_s22 = sld [smem:[#allocation2 + $0x100]]  ;;  %s862_s30 = sld [smem:[#allocation2 + $0x101]]  ;;  %vm253_vm2 = vcmask 1043456  }
  0x51   : > { %538 = vpow2.f32 %v453_v8  ;;  %v242_v21 = vstv %s853_s26  ;;  %v243_v22 = vstv %s444_s23  ;;  %v319_v25 = vmul.f32 1.442695, %v456_v7  ;;  %v447_v35 = vld.sshfl [vmem:[%s949_s2] sm:$0x33 pattern:$0x76325410] }
  0x52   : > { %540 = vpow2.f32 %v460_v11  ;;  %v244_v28 = vsel %vm241_vm0, %v242_v21, %v243_v22  ;;  %v321_v29 = vmul.f32 1.442695, %v457_v9  ;;  %v230_v44 = vcombine.high %v447_v35, %v447_v35  ;;  %s878_s4 = scalar_lea.vmem [#allocation7], %s469_s28  ;;  %s470_s9 = smul.u32 768, %s733_s16 }
  0x53   : > { %542 = vpow2.f32 %v237_v12  ;;  %v246_v36 = vrot.slane %v244_v28, 6  ;;  %s352_s8 = sshll.u32 %s878_s4, 4  ;;  %s339_s19 = scalar_lea.sflag [#allocation4], %s843_s27  ;;  %s891_s8 = int_to_ptr.vmem [resolvable:$true] %s352_s8 }
  0x54   : > { %544 = vpow2.f32 %v461_v13  ;;  %s901_s16 = scalar_lea.hbm %s950_s3, %s470_s9  ;;  %s613_s28 = scalar_lea.vmem %s891_s8, 768 }
  0x55   : > { %v283_v30 = vstv %s855_s11  ;;  %v284_v31 = vstv %s857_s20  ;;  %p614_p13 = scmp.ne.s32.totalorder %s891_s8, %s613_s28  ;;  %p964_p3 = scmp.ne.s32.totalorder %s956_s24, 0 }
  0x56   : > { %v285_v39 = vsel %vm241_vm0, %v283_v30, %v284_v31  ;;  %v323_v40 = vstv %s860_s22  ;;  %v324_v41 = vstv %s862_s30  ;;  %s689_s29 = smov [#allocation7]  }
  0x57   : > { %v287_v49 = vrot.slane %v285_v39, 6  ;;  %v325_v50 = vsel %vm241_vm0, %v323_v40, %v324_v41  ;;  %p615_p8 = pnand %p614_p13, %p964_p3  ;;  %s617_s5 = sshll.u32 %s689_s29, 4  ;;  %s618_s5 = int_to_ptr.vmem [resolvable:$false] %s617_s5 }
  0x58   : > { %v533_v15 = vpop.eup %532  ;;  %v327_v58 = vrot.slane %v325_v50, 6  ;;  %s619_s26 = scalar_lea.vmem %s618_s5, 1536  ;;  %p620_p10 = scmp.lt.s32.totalorder %s891_s8, %s618_s5 }
  0x59   : > { %v216_v17 = vadd.f32 1.0, %v533_v15  ;;  %v535_v19 = vpop.eup %534  ;;  %p616_p9 = pneg %p615_p8  ;;  %p621_p1 = scmp.lt.s32.totalorder %s619_s26, %s613_s28 }
  0x5a   : > { %v217_v23 = vadd.f32 1.0, %v535_v19  ;;  %v537_v24 = vpop.eup %536 }
  0x5b   : > { %546 = vrcp.f32 %v216_v17  ;;  %v269_v26 = vadd.f32 1.0, %v537_v24  ;;  %v539_v27 = vpop.eup %538  ;;  %p622_p4 = por %p621_p1, %p620_p10 }
  0x5c   : > { %548 = vpow2.f32 %v239_v16  ;;  %v270_v32 = vadd.f32 1.0, %v539_v27  ;;  %v541_v33 = vpop.eup %540 }
  0x5d   : > { %550 = vpow2.f32 %v279_v18  ;;  %v543_v34 = vpop.eup %542  ;;  %v309_v37 = vadd.f32 1.0, %v541_v33  ;;  %p623_p11 = pnand %p622_p4, %p616_p9 }
  0x5e   : > { %552 = vrcp.f32 %v217_v23  ;;  %v545_v38 = vpop.eup %544  ;;  %v248_v47 = vmul.f32 %v543_v34, %v246_v36 }
  0x5f   : > { %554 = vpow2.f32 %v281_v20  ;;  %v310_v42 = vadd.f32 1.0, %v545_v38 }
  0x60   : > { %556 = vrcp.f32 %v269_v26 }
  0x61   : > { %558 = vpow2.f32 %v319_v25 }
  0x62   : > { %560 = vrcp.f32 %v270_v32 }
  0x63   : > { %562 = vpow2.f32 %v321_v29 }
  0x64   : > { %564 = vrcp.f32 %v309_v37 }
  0x65   : > { %v547_v43 = vpop.eup %546  ;;  %566 = vrcp.f32 %v310_v42 }
  0x66   : > { %v549_v45 = vpop.eup %548  ;;  %v233_v46 = vadd.f32 %v547_v43, %v447_v35 }
  0x67   : > { %v551_v48 = vpop.eup %550  ;;  %v249_v55 = vmul.f32 %v549_v45, %v246_v36 }
  0x68   : > { %v553_v51 = vpop.eup %552  ;;  %v235_v52 = vmul.f32 4.0, %v233_v46  ;;  %v289_v63 = vmul.f32 %v551_v48, %v287_v49 }
  0x69   : > { %v555_v53 = vpop.eup %554  ;;  %v234_v54 = vadd.f32 %v553_v51, %v230_v44 }
  0x6a   : > { %v557_v56 = vpop.eup %556  ;;  %v251_v57 = vsel %vm250_vm1, %v235_v52, %v248_v47  ;;  %v290_v5 = vmul.f32 %v555_v53, %v287_v49 }
  0x6b   : > { %v559_v59 = vpop.eup %558  ;;  %v254_v60 = vsel %vm253_vm2, %v251_v57, %v547_v43  ;;  %v236_v61 = vmul.f32 4.0, %v234_v54  ;;  %v275_v62 = vadd.f32 %v557_v56, %v447_v35 }
  0x6c   : > { %v561_v0 = vpop.eup %560  ;;  %256 = vst [vmem:[%s878_s4] sm:$0xff] %v254_v60  ;;  %v329_v11 = vmul.f32 %v559_v59, %v327_v58 }
  0x6d   : > { %v563_v1 = vpop.eup %562  ;;  %v252_v2 = vsel %vm250_vm1, %v236_v61, %v249_v55  ;;  %v277_v3 = vmul.f32 4.0, %v275_v62  ;;  %v276_v4 = vadd.f32 %v561_v0, %v230_v44 }
  0x6e   : > { %v565_v6 = vpop.eup %564  ;;  %v255_v7 = vsel %vm253_vm2, %v252_v2, %v553_v51  ;;  %v330_v17 = vmul.f32 %v563_v1, %v327_v58 }
  0x6f   : > { %257 = vst [vmem:[%s878_s4 + $0x8] sm:$0xff] %v255_v7  ;;  %v291_v8 = vsel %vm250_vm1, %v277_v3, %v289_v63  ;;  %v278_v9 = vmul.f32 4.0, %v276_v4  ;;  %v315_v10 = vadd.f32 %v565_v6, %v447_v35  ;;  %v567_v12 = vpop.eup %566 }
  0x70   : > { %v293_v13 = vsel %vm253_vm2, %v291_v8, %v557_v56  ;;  %v316_v16 = vadd.f32 %v567_v12, %v230_v44 }
  0x71   : > { %454 = vst [vmem:[%s878_s4 + $0x10] sm:$0xff] %v293_v13  ;;  %v292_v14 = vsel %vm250_vm1, %v278_v9, %v290_v5  ;;  %v317_v15 = vmul.f32 4.0, %v315_v10 }
  0x72   : > { %v294_v18 = vsel %vm253_vm2, %v292_v14, %v561_v0  ;;  %v318_v20 = vmul.f32 4.0, %v316_v16 }
  0x73   : > { %455 = vst [vmem:[%s878_s4 + $0x18] sm:$0xff] %v294_v18  ;;  %v331_v19 = vsel %vm250_vm1, %v317_v15, %v329_v11 }
  0x74   : > { %v333_v21 = vsel %vm253_vm2, %v331_v19, %v565_v6  ;;  %v332_v22 = vsel %vm250_vm1, %v318_v20, %v330_v17 }
  0x75   : > { %462 = vst [vmem:[%s878_s4 + $0x20] sm:$0xff] %v333_v21  ;;  %v334_v23 = vsel %vm253_vm2, %v332_v22, %v567_v12 }
  0x76   : > { %463 = vst [vmem:[%s878_s4 + $0x28] sm:$0xff] %v334_v23 }
  0x77   : > { %626 = shalt.err (!%p623_p11)
}
  0x78   : > { %s627_s23 = scalar_lea.hbm %s901_s16, 768  ;;  %s631_s22 = scalar_lea.hbm %s950_s3, 1536 }
  0x79   : > { %p628_p0 = scmp.ne.s32.totalorder %s901_s16, %s627_s23  ;;  %p632_p5 = scmp.lt.u32.totalorder %s901_s16, %s950_s3 }
  0x7a   : > { %p633_p12 = scmp.lt.u32.totalorder %s631_s22, %s627_s23  ;;  %p635_p13 = scmp.lt.u32.totalorder %s627_s23, %s901_s16 }
  0x7b   : > { %p629_p2 = pnand %p628_p0, %p964_p3 }
  0x7c   : > { %p634_p6 = por %p633_p12, %p632_p5 }
  0x7d   : > { %p630_p7 = pneg %p629_p2 }
  0x7e   : > { %p636_p8 = por %p635_p13, %p634_p6 }
  0x80   : > { %p637_p9 = pnand %p636_p8, %p630_p7 }
  0x82   : > { %640 = shalt.err (!%p637_p9)
}
  0x83   : > { %s690_s7 = smov 256   ;;  %s691_s4 = smov 16  }
  0x84   : > { %477 = dma.vmem_to_hbm [thread:$0]  (%p964_p3), %s891_s8, 768, %s901_s16, %s339_s19, %s690_s7, %s690_s7, %s691_s4  }
  0x85 PF: > { %s367_s9 = sand.u32 1, %s671_s12   ;;  %p965_p10 = scmp.ne.s32.totalorder %s957_s25, 0 }
  0x86   : > { %p966_p1 = scmp.ge.s32.totalorder %s683_s15, 2  ;;  %s368_s10 = scalar_lea.sflag [#allocation4], %s367_s9 }
  0x88   : > { %p488_p4 = pnand %p966_p1, %p965_p10 }
  0x8a   : > { %666 = dma.done.wait (!%p488_p4), %s368_s10, 768  }
  0x8b   : > { %668 = vsyncadd (!%p488_p4), %s368_s10, 4294966528  ;;  %p17_p11 = scmp.ge.s32.totalorder %s737_s18, 4   ;;  %s967_s12 = smov %s675_s13 }
  0x8c   : > { %s968_s13 = smov %s679_s14  ;;  %s969_s14 = smov %s749_s21 }
  0x8d   : > { %s970_s15 = smov %s737_s18  ;;  %19 = sbr.rel (!%p17_p11) target bundleno = 6 (0x6), region = 86 }
  0x94   :  { %373 = vsyncpa [#allocation3], 1 }
  0x95   :  { %375 = vsyncpa [#allocation3 + $0x1], 1 }
  0x96   :  { %376 = vsyncpa [#allocation4], 1 }
  0x97   :  { %378 = vsyncpa [#allocation4 + $0x1], 1 }
  0x98   :  { %379 = vsyncpa [#allocation5], 1 }
  0x99   :  { %381 = vsyncpa [#allocation5 + $0x1], 1 }

</bundles_post_ra>
